<compile_context>
chip_gen: v7x
topology: tpu7x:2x2x1
jax: 0.10.0
libtpu: 0.0.40
codegen_flags: <defaults>
</compile_context>

<pallas_src>
import functools
import math
from collections import namedtuple

import jax
import jax.numpy as jnp
import numpy as np
from jax.experimental import pallas as pl
from jax.experimental.pallas import tpu as pltpu


# ------------------------- base ("cell") anchors -----------------------------
# Tiny (A x 4) computation; matches torch generate_anchors() (round half-to-even).
# NOTE: torch computes base anchors in the feature dtype; we use float32, which is
# bitwise identical for fp32 features (and torch's final anchors are promoted to
# float32 anyway, since the shift grid is float32).
def generate_base_anchors_np(scales, aspect_ratios):
    scales = np.asarray(scales, dtype=np.float32)
    aspect_ratios = np.asarray(aspect_ratios, dtype=np.float32)
    h_ratios = np.sqrt(aspect_ratios)
    w_ratios = 1.0 / h_ratios
    ws = (w_ratios[:, None] * scales[None, :]).reshape(-1)
    hs = (h_ratios[:, None] * scales[None, :]).reshape(-1)
    base_anchors = np.stack([-ws, -hs, ws, hs], axis=1) / 2.0
    return np.round(base_anchors)


# ---------------------------- Pallas hot path --------------------------------
# out[g, c] = const[0, c] + (g * y_step) * const[1, c]
#   const[0, c] = base[c % (A*4)] + (x-shift or intra-block y-shift)   (static)
#   const[1, c] = 1.0 for y coordinates, 0.0 for x coordinates         (static)
#   y_step      = R * stride_h  (y advance per packed output row)
def _anchor_kernel(const_ref, out_ref, *, tile_rows, y_step):
    i = pl.program_id(0)
    g = jax.lax.broadcasted_iota(jnp.int32, (tile_rows, 1), 0) + i * tile_rows
    y_row = g.astype(jnp.float32) * jnp.float32(y_step)                 # (T, 1)
    out_ref[...] = const_ref[0:1, :] + y_row * const_ref[1:2, :]        # (T, LANE)


def grid_anchors_pallas(base_anchors_np, fp_h, fp_w, stride_h, stride_w):
    base = np.asarray(base_anchors_np, dtype=np.float32)
    num_a = base.shape[0]
    a4 = 4 * num_a
    hw = fp_h * fp_w

    # Packed-row geometry: each output row holds R whole feature-map rows so the
    # lane width R*fp_w*a4 is a multiple of 128 (lane-dense vregs, unmasked stores).
    r = 128 // math.gcd(fp_w * a4, 128)
    p = r * fp_w
    lane = p * a4

    # Static lane patterns (host-side numpy; compile-time only), stacked (2, lane).
    c = np.arange(lane)
    lp = c // a4                        # pixel within packed row, 0..P-1
    ac = c % a4                         # anchor*4 + coord
    coord = ac % 4                      # 0:x1 1:y1 2:x2 3:y2
    x_part = (lp % fp_w).astype(np.float32) * np.float32(stride_w)
    y_part = (lp // fp_w).astype(np.float32) * np.float32(stride_h)
    const_pat = (base.reshape(-1)[ac]
                 + np.where(coord % 2 == 0, x_part, y_part)).astype(np.float32)
    y_mask = (coord % 2 == 1).astype(np.float32)
    const_stack = np.stack([const_pat, y_mask], axis=0)          # (2, lane)

    # Tile sizing: ~3 MiB output tiles (pure HBM-store bound), 8-sublane aligned,
    # ragged last block handled by Pallas (no output padding / post-slice).
    num_pr = -(-fp_h // r)                                        # packed rows
    bytes_per_row = lane * 4
    target_rows = max(8, ((3 << 20) // bytes_per_row) // 8 * 8)
    if num_pr <= 8:
        tile_rows = num_pr                                        # full-array block
    else:
        half = -(-num_pr // 2)
        half_aligned = -(-half // 8) * 8                          # grid >= 2 (v7x)
        tile_rows = max(8, min(target_rows, half_aligned))
    grid_len = pl.cdiv(num_pr, tile_rows)

    # Explicit scoped-VMEM budget: 2 output buffers + the 8-sublane-padded constant
    # block (double-buffered) + headroom; matters on v5e's 16 MiB default.
    vmem_needed = 2 * tile_rows * lane * 4 + 2 * 8 * lane * 4 + (2 << 20)
    vmem_limit = int(min(max(vmem_needed, 8 << 20), 32 << 20))

    kernel = functools.partial(
        _anchor_kernel, tile_rows=tile_rows, y_step=float(r * stride_h)
    )
    out = pl.pallas_call(
        kernel,
        out_shape=jax.ShapeDtypeStruct((num_pr, lane), jnp.float32),
        grid=(grid_len,),
        in_specs=[
            pl.BlockSpec((2, lane), lambda i: (0, 0)),            # constant: DMA'd once
        ],
        out_specs=pl.BlockSpec((tile_rows, lane), lambda i: (i, 0)),
        compiler_params=pltpu.CompilerParams(
            dimension_semantics=("parallel",),
            vmem_limit_bytes=vmem_limit,
        ),
    )(jnp.asarray(const_stack))

    anchors = out.reshape(num_pr * p * num_a, 4)
    if num_pr * r != fp_h:
        # Rare case (R does not divide fp_h): drop the tail of the last packed row.
        # Lazy slice, fused into the level concatenation by XLA.
        anchors = anchors[: hw * num_a]
    return anchors


# ------------------------------ module wrapper --------------------------------
ImageList = namedtuple("ImageList", ["tensors", "image_sizes"])


class AnchorsGenerator:
    def __init__(self, sizes=((128, 256, 512),), aspect_ratios=((0.5, 1.0, 2.0),)):
        assert len(sizes) == len(aspect_ratios), "anchor sizes must equal to anchor ratios!"
        self.sizes = sizes
        self.aspect_ratios = aspect_ratios
        self.cell_anchors = None
        self._cache = {}

    def set_cell_anchors(self, dtype):
        # Built once, host-side numpy (no per-forward device upload; values are the
        # compile-time inputs of the Pallas constant pattern).
        if self.cell_anchors is None:
            self.cell_anchors = [
                generate_base_anchors_np(s, a)
                for s, a in zip(self.sizes, self.aspect_ratios)
            ]

    def num_anchors_per_location(self):
        return [len(s) * len(a) for s, a in zip(self.sizes, self.aspect_ratios)]

    def grid_anchors(self, feature_map_sizes, strides):
        cell_anchors = self.cell_anchors
        assert cell_anchors is not None
        return [
            grid_anchors_pallas(base, fh, fw, sh, sw)
            for (fh, fw), (sh, sw), base in zip(feature_map_sizes, strides, cell_anchors)
        ]

    def cached_grid_anchors(self, feature_map_sizes, strides):
        # Anchors depend only on static shapes: build + concatenate once, reuse for
        # every image and every forward.  (torch clears its cache each forward;
        # keeping it is a pure optimization, values are identical.)
        # TODO(synk): per-level lane widths differ, so the cross-level concat stays a
        # single (cached, one-time) XLA concatenate instead of one fused pallas_call.
        key = str(feature_map_sizes) + str(strides)
        if key in self._cache:
            return self._cache[key]
        per_level = self.grid_anchors(feature_map_sizes, strides)
        cat = jnp.concatenate(per_level, axis=0)
        self._cache[key] = cat
        return cat

    def __call__(self, image_list, feature_maps):
        feature_map_sizes = tuple(tuple(int(d) for d in fm.shape[-2:]) for fm in feature_maps)
        image_size = image_list.tensors.shape[-2:]
        dtype = feature_maps[0].dtype
        # torch casts the float ratio to int64 -> truncation
        strides = tuple(
            (int(image_size[0] / g[0]), int(image_size[1] / g[1])) for g in feature_map_sizes
        )
        self.set_cell_anchors(dtype)
        cat = self.cached_grid_anchors(feature_map_sizes, strides)
        # same static anchor tensor reused for every image in the batch
        return [cat for _ in image_list.image_sizes]


# ------------------------------- reference ------------------------------------
def _reference_level(base_anchors, fp_h, fp_w, stride_h, stride_w):
    base = np.asarray(base_anchors, dtype=np.float32)
    sx = np.arange(0, fp_w, dtype=np.float32) * stride_w
    sy = np.arange(0, fp_h, dtype=np.float32) * stride_h
    shift_y, shift_x = np.meshgrid(sy, sx, indexing="ij")
    shift_x = shift_x.reshape(-1)
    shift_y = shift_y.reshape(-1)
    shifts = np.stack([shift_x, shift_y, shift_x, shift_y], axis=1)
    return (shifts[:, None, :] + base[None, :, :]).reshape(-1, 4)


if __name__ == "__main__":
    key = jax.random.PRNGKey(0)
    k1, k2, k3 = jax.random.split(key, 3)

    batch, channels = 2, 4
    images = jax.random.normal(k1, (batch, 3, 64, 64), dtype=jnp.float32)
    feat0 = jax.random.normal(k2, (batch, channels, 16, 16), dtype=jnp.float32)
    feat1 = jax.random.normal(k3, (batch, channels, 8, 8), dtype=jnp.float32)
    image_list = ImageList(tensors=images, image_sizes=[(64, 64)] * batch)

    gen = AnchorsGenerator(
        sizes=((32, 64, 128), (64, 128, 256)),
        aspect_ratios=((0.5, 1.0, 2.0), (0.5, 1.0, 2.0)),
    )
    anchors = gen(image_list, [feat0, feat1])
    anchors = jax.block_until_ready(anchors)

    # correctness check against a numpy reference of the torch semantics
    ref_levels = []
    for (s, a), fm in zip(zip(gen.sizes, gen.aspect_ratios), [feat0, feat1]):
        fh, fw = fm.shape[-2:]
        sh, sw = int(64 / fh), int(64 / fw)
        base = generate_base_anchors_np(s, a)
        ref_levels.append(_reference_level(base, fh, fw, sh, sw))
    ref = np.concatenate(ref_levels, axis=0)

    assert len(anchors) == batch
    expected_rows = 16 * 16 * 9 + 8 * 8 * 9
    assert anchors[0].shape == (expected_rows, 4), anchors[0].shape
    for per_image in anchors:
        np.testing.assert_allclose(np.asarray(per_image), ref, rtol=0, atol=0)

    print("KERNEL_OK")
</pallas_src>

<mosaic_0001>
module attributes {stable_mosaic.version = 11 : i64} {
  func.func @_anchor_kernel(%arg0: i32, %arg1: memref<2x1152xf32, #tpu.memory_space<vmem>>, %arg2: memref<8x1152xf32, #tpu.memory_space<vmem>>) attributes {dimension_semantics = [#tpu.dimension_semantics<parallel>], iteration_bounds = array<i64: 1>, scalar_prefetch = 0 : i64, scratch_operands = 0 : i64, tpu.core_type = #tpu.core_type<tc>, window_params = [{pipeline_mode = #tpu.pipeline_mode<synchronous>, transform_indices = @transform_0, window_bounds = array<i64: 2, 1152>}, {transform_indices = @transform_1, window_bounds = array<i64: 8, 1152>}]} {
    %0 = tpu.iota {dimensions = array<i32: 0>} : vector<8x1xi32>
    %c8_i32 = arith.constant 8 : i32
    %1 = arith.muli %arg0, %c8_i32 : i32
    %2 = vector.broadcast %1 : i32 to vector<8x1xi32>
    %3 = arith.addi %0, %2 : vector<8x1xi32>
    %4 = arith.sitofp %3 : vector<8x1xi32> to vector<8x1xf32>
    %cst = arith.constant 8.000000e+00 : f32
    %5 = vector.broadcast %cst : f32 to vector<8x1xf32>
    %6 = arith.mulf %4, %5 : vector<8x1xf32>
    %c0 = arith.constant 0 : index
    %c0_0 = arith.constant 0 : index
    %7 = vector.load %arg1[%c0, %c0_0] : memref<2x1152xf32, #tpu.memory_space<vmem>>, vector<1x1152xf32>
    %c1 = arith.constant 1 : index
    %c0_1 = arith.constant 0 : index
    %8 = vector.load %arg1[%c1, %c0_1] : memref<2x1152xf32, #tpu.memory_space<vmem>>, vector<1x1152xf32>
    %9 = vector.broadcast %6 : vector<8x1xf32> to vector<8x1152xf32>
    %10 = vector.broadcast %8 : vector<1x1152xf32> to vector<8x1152xf32>
    %11 = arith.mulf %9, %10 : vector<8x1152xf32>
    %12 = vector.broadcast %7 : vector<1x1152xf32> to vector<8x1152xf32>
    %13 = arith.addf %12, %11 : vector<8x1152xf32>
    %c0_2 = arith.constant 0 : index
    %c0_3 = arith.constant 0 : index
    %14 = vector.load %arg2[%c0_2, %c0_3] : memref<8x1152xf32, #tpu.memory_space<vmem>>, vector<8x1152xf32>
    tpu.vector_store %arg2[%c0_2, %c0_3], %13 {strides = array<i32>} : memref<8x1152xf32, #tpu.memory_space<vmem>>, vector<8x1152xf32>,
    return
  }
  func.func @transform_0(%arg0: i32) -> (i32, i32) {
    %c0_i32 = arith.constant 0 : i32
    %c0_i32_0 = arith.constant 0 : i32
    %c0_i32_1 = arith.constant 0 : i32
    return %c0_i32, %c0_i32_0 : i32, i32
  }
  func.func @transform_1(%arg0: i32) -> (i32, i32) {
    %c0_i32 = arith.constant 0 : i32
    %c0_i32_0 = arith.constant 0 : i32
    return %arg0, %c0_i32 : i32, i32
  }
}

</mosaic_0001>

<bundles_post_ra>
// kernel: tpu_custom_call.1
= control target key start
LH: loop header
LB: loop body
LE: loop exit
PB: predicated region body
PF: predicated region fallthrough
CT: control target
= control target key end

     0   :  { %6 = vsyncpa [#allocation3], 0  ;;  %s257_s0 = inlined_call_operand.hbm [shape: f32[2,1152], index: 0, kind: input, shape index: {}]   ;;  %s258_s1 = inlined_call_operand.hbm [shape: f32[8,1152], index: 1, kind: output, shape index: {}]  }
   0x1   :  { %7 = vsyncpa [#allocation4], 0  ;;  %s221_s6 = smov [#allocation2]   ;;  %s173_s10 = scalar_lea.hbm %s257_s0, 288 }
   0x2   :  { %s14_s7 = sshll.u32 %s221_s6, 4  ;;  %p174_p0 = scmp.ne.s32.totalorder %s257_s0, %s173_s10  ;;  %s15_s7 = int_to_ptr.vmem [resolvable:$true] %s14_s7 }
   0x3   :  { %p177_p1 = scmp.lt.u32.totalorder %s173_s10, %s257_s0 }
   0x5   :  { %p179_p2 = pnand %p177_p1, %p174_p0 }
   0x7   :  { %182 = shalt.err (!%p179_p2)
}
   0x8   :  { %s183_s15 = scalar_lea.vmem %s15_s7, 288  ;;  %p188_p4 = scmp.lt.s32.totalorder %s15_s7, %s15_s7 }
   0x9   :  { %p184_p3 = scmp.ne.s32.totalorder %s15_s7, %s183_s15  ;;  %p189_p5 = scmp.lt.s32.totalorder %s183_s15, %s183_s15 }
   0xb   :  { %p190_p6 = por %p189_p5, %p188_p4 }
   0xd   :  { %p191_p7 = pnand %p190_p6, %p184_p3 }
   0xf   :  { %194 = shalt.err (!%p191_p7)
}
  0x10   :  { %17 = dma.hbm_to_vmem [thread:$0]  %s257_s0, 288, %s15_s7, [#allocation3]  }
  0x11   :  { %217 = dma.done.wait [#allocation3], 288  }
  0x12   :  { %218 = vsyncadd [#allocation3], 4294967008  ;;  %v21_v0 = vlaneseq  ;;  %v28_v10 = vld [vmem:[#allocation2] ss:$2 sm:$0xff]  ;;  %v32_v11 = vld [vmem:[#allocation2 + $0x1] ss:$2 sm:$0xff] }
  0x13   :  { %v30_v34 = vld [vmem:[#allocation2 + $0x10] ss:$2 sm:$0x1]  ;;  %v34_v35 = vld [vmem:[#allocation2 + $0x11] ss:$2 sm:$0x1] }
  0x14   :  { %v22_v1 = vshrl.u32 %v21_v0, 7  ;;  %s222_s0 = smov [#allocation5]  }
  0x15   :  { %s162_s18 = sshll.u32 %s222_s0, 4  ;;  %s163_s18 = int_to_ptr.vmem [resolvable:$true] %s162_s18 }
  0x16   :  { %v26_v2 = vcvt.s32.f32 %v22_v1  ;;  %v39_v3 = vsub.s32 0, %v22_v1  ;;  %v43_v4 = vsub.s32 1, %v22_v1  ;;  %v47_v5 = vsub.s32 2, %v22_v1  ;;  %s195_s19 = scalar_lea.vmem %s163_s18, 1152  ;;  %p200_p9 = scmp.lt.s32.totalorder %s163_s18, %s163_s18 }
  0x17   :  { %v51_v6 = vsub.s32 3, %v22_v1  ;;  %v55_v8 = vsub.s32 4, %v22_v1  ;;  %v59_v9 = vsub.s32 5, %v22_v1  ;;  %v63_v12 = vsub.s32 6, %v22_v1  ;;  %p196_p8 = scmp.ne.s32.totalorder %s163_s18, %s195_s19  ;;  %p201_p10 = scmp.lt.s32.totalorder %s195_s19, %s195_s19 }
  0x18   :  { %v27_v7 = vmul.f32 8.0, %v26_v2  ;;  %v67_v13 = vsub.s32 7, %v22_v1  ;;  %v40_v14 = vrot.slane %v32_v11, %v39_v3  ;;  %v96_v15 = vrot.slane %v28_v10, %v39_v3 }
  0x19   :  { %v44_v16 = vrot.slane %v32_v11, %v43_v4  ;;  %v100_v17 = vrot.slane %v28_v10, %v43_v4  ;;  %v48_v18 = vrot.slane %v32_v11, %v47_v5  ;;  %v104_v19 = vrot.slane %v28_v10, %v47_v5  ;;  %p202_p11 = por %p201_p10, %p200_p9 }
  0x1a   :  { %v52_v20 = vrot.slane %v32_v11, %v51_v6  ;;  %v108_v21 = vrot.slane %v28_v10, %v51_v6  ;;  %v82_v22 = vmul.f32 %v40_v14, %v27_v7  ;;  %v56_v24 = vrot.slane %v32_v11, %v55_v8 }
  0x1b   :  { %v83_v23 = vmul.f32 %v44_v16, %v27_v7  ;;  %v112_v25 = vrot.slane %v28_v10, %v55_v8  ;;  %v84_v26 = vmul.f32 %v48_v18, %v27_v7  ;;  %v60_v28 = vrot.slane %v32_v11, %v59_v9  ;;  %p203_p12 = pnand %p202_p11, %p196_p8 }
  0x1c   :  { %v85_v27 = vmul.f32 %v52_v20, %v27_v7  ;;  %v116_v29 = vrot.slane %v28_v10, %v59_v9  ;;  %v138_v30 = vadd.f32 %v96_v15, %v82_v22  ;;  %v86_v32 = vmul.f32 %v56_v24, %v27_v7 }
  0x1d   :  { %v139_v31 = vadd.f32 %v100_v17, %v83_v23  ;;  %v64_v33 = vrot.slane %v32_v11, %v63_v12  ;;  %v140_v36 = vadd.f32 %v104_v19, %v84_v26  ;;  %v87_v38 = vmul.f32 %v60_v28, %v27_v7 }
  0x1e   :  { %v141_v37 = vadd.f32 %v108_v21, %v85_v27  ;;  %v120_v39 = vrot.slane %v28_v10, %v63_v12  ;;  %147 = vst [vmem:[#allocation5] sm:$0xff] %v138_v30  ;;  %v142_v40 = vadd.f32 %v112_v25, %v86_v32  ;;  %v68_v42 = vrot.slane %v32_v11, %v67_v13 }
  0x1f   :  { %148 = vst [vmem:[#allocation5 + $0x8] sm:$0xff] %v139_v31  ;;  %v88_v41 = vmul.f32 %v64_v33, %v27_v7  ;;  %v124_v43 = vrot.slane %v28_v10, %v67_v13  ;;  %149 = vst [vmem:[#allocation5 + $0x10] sm:$0xff] %v140_v36  ;;  %v143_v44 = vadd.f32 %v116_v29, %v87_v38 }
  0x20   :  { %150 = vst [vmem:[#allocation5 + $0x18] sm:$0xff] %v141_v37  ;;  %v72_v45 = vrot.slane %v34_v35, %v39_v3  ;;  %v128_v46 = vrot.slane %v30_v34, %v39_v3  ;;  %151 = vst [vmem:[#allocation5 + $0x20] sm:$0xff] %v142_v40  ;;  %v89_v48 = vmul.f32 %v68_v42, %v27_v7 }
  0x21   :  { %v144_v47 = vadd.f32 %v120_v39, %v88_v41  ;;  %152 = vst [vmem:[#allocation5 + $0x28] sm:$0xff] %v143_v44 }
  0x22   :  { %v90_v49 = vmul.f32 %v72_v45, %v27_v7  ;;  %v145_v50 = vadd.f32 %v124_v43, %v89_v48 }
  0x23   :  { %153 = vst [vmem:[#allocation5 + $0x30] sm:$0xff] %v144_v47 }
  0x24   :  { %v146_v51 = vadd.f32 %v128_v46, %v90_v49  ;;  %154 = vst [vmem:[#allocation5 + $0x38] sm:$0xff] %v145_v50 }
  0x26   :  { %155 = vst [vmem:[#allocation5 + $0x40] sm:$0xff] %v146_v51 }
  0x27   :  { %206 = shalt.err (!%p203_p12)
}
  0x28   :  { %s207_s22 = scalar_lea.hbm %s258_s1, 1152 }
  0x29   :  { %p208_p13 = scmp.ne.s32.totalorder %s258_s1, %s207_s22  ;;  %p211_p0 = scmp.lt.u32.totalorder %s207_s22, %s258_s1 }
  0x2b   :  { %p213_p1 = pnand %p211_p0, %p208_p13 }
  0x2d   :  { %216 = shalt.err (!%p213_p1)
}
  0x2e   :  { %165 = dma.vmem_to_hbm [thread:$0]  %s163_s18, 1152, %s258_s1, [#allocation4]  }
  0x2f   :  { %219 = dma.done.wait [#allocation4], 1152  }
  0x30   :  { %220 = vsyncadd [#allocation4], 4294966144 }
  0x31   :  { %169 = vsyncpa [#allocation3], 1 }
  0x32   :  { %170 = vsyncpa [#allocation4], 1 }

</bundles_post_ra>
